<compile_context>
chip_gen: v5e
topology: v5e:2x2
jax: 0.10.0
libtpu: 0.0.40
codegen_flags: <defaults>
</compile_context>

<pallas_src>
import functools

import jax
import jax.numpy as jnp
from jax import lax
from jax.experimental import pallas as pl
from jax.experimental.pallas import tpu as pltpu


def _round_up(x: int, m: int) -> int:
    return ((x + m - 1) // m) * m


def _cdiv(a: int, b: int) -> int:
    return (a + b - 1) // b


def _buffered_block_spec(shape, index_map, buffers: int):
    """BlockSpec with deeper multi-buffering when this JAX supports it."""
    if buffers > 2 and hasattr(pl, "Buffered"):
        try:
            return pl.BlockSpec(shape, index_map,
                                pipeline_mode=pl.Buffered(buffers))
        except TypeError:
            pass
    return pl.BlockSpec(shape, index_map)


def _solve_whitening(S_raw, rs_col, *, T: int, eps: float, n_true: int,
                     m_true: int):
    """From raw Z·Zᵀ and row sums, compute (B_scaled, bmean) in f32.

    B_scaled = NS_T( (Zc·Zcᵀ + eps·I) / ||.||_F ) / sqrt(||.||_F)
    bmean    = B_scaled @ mean_col
    """
    inv_n = jnp.float32(1.0 / n_true)
    mean_col = rs_col * inv_n                                  # (Mp, 1)
    # Centering as a rank-1 outer product (K=1 matmul — no transpose needed).
    S = S_raw - lax.dot_general(mean_col, rs_col,
                                (((1,), (1,)), ((), ())),
                                preferred_element_type=jnp.float32)
    Mp = S.shape[0]
    row = lax.broadcasted_iota(jnp.int32, (Mp, Mp), 0)
    col = lax.broadcasted_iota(jnp.int32, (Mp, Mp), 1)
    # Identity masked to the true group size so padded rows stay exactly zero.
    eye = jnp.where((row == col) & (row < m_true), 1.0, 0.0).astype(jnp.float32)
    S = S + jnp.float32(eps) * eye
    ssq = jnp.sum(S * S)
    S = S * lax.rsqrt(ssq)                                     # S / ||S||_F

    def ns_body(_, Bt):
        B2 = jnp.dot(Bt, Bt, preferred_element_type=jnp.float32)
        B3 = jnp.dot(B2, Bt, preferred_element_type=jnp.float32)
        return 1.5 * Bt - 0.5 * jnp.dot(B3, S,
                                        preferred_element_type=jnp.float32)

    B = lax.fori_loop(0, T, ns_body, eye, unroll=True)
    # Fold the output scale 1/sqrt(||S||_F) into the small MxM matrix ...
    B = B * lax.rsqrt(jnp.sqrt(ssq))
    # ... and fold the mean in as a per-row offset for the emit matmul.
    bmean = jnp.dot(B, mean_col, preferred_element_type=jnp.float32)  # (Mp, 1)
    return B, bmean


# ----------------------------------------------------------------------------
# Resident-slab path: grid=(G,), whole (Mp, Np) group slab in VMEM (1R + 1W).
# ----------------------------------------------------------------------------
def _ortho_resident_kernel(z_ref, o_ref, *, T: int, eps: float, n_true: int,
                           m_true: int, chunk: int, slab_dtype):
    Mp = z_ref.shape[1]
    Np = z_ref.shape[2]

    # Accumulate row sums + Gram from in-VMEM chunks of the resident slab.
    gram = jnp.zeros((Mp, Mp), jnp.float32)
    rs = jnp.zeros((Mp, 1), jnp.float32)
    for c0 in range(0, Np, chunk):
        c1 = min(c0 + chunk, Np)
        zc = z_ref[0, :, c0:c1]                               # (Mp, c1-c0)
        rs = rs + jnp.sum(zc.astype(jnp.float32), axis=-1, keepdims=True)
        zl = zc.astype(slab_dtype)
        gram = gram + lax.dot_general(zl, zl, (((1,), (1,)), ((), ())),
                                      preferred_element_type=jnp.float32)

    B, bmean = _solve_whitening(gram, rs, T=T, eps=eps, n_true=n_true,
                                m_true=m_true)
    B_cast = B.astype(slab_dtype)

    # Emit from the same resident slab (no second HBM read of Z).
    for c0 in range(0, Np, chunk):
        c1 = min(c0 + chunk, Np)
        zl = z_ref[0, :, c0:c1].astype(slab_dtype)
        w = jnp.dot(B_cast, zl, preferred_element_type=jnp.float32) - bmean
        o_ref[0, :, c0:c1] = w.astype(o_ref.dtype)


# ----------------------------------------------------------------------------
# Streaming fallback path: grid=(G, 2*NT), Z streamed twice (2R + 1W).
# ----------------------------------------------------------------------------
def _ortho_stream_kernel(z_ref, o_ref, s_acc, rs_col, bmean_scr, b_scr,
                         *, T: int, eps: float, n_true: int, m_true: int,
                         nt: int, slab_dtype):
    t = pl.program_id(1)

    @pl.when(t == 0)
    def _init():
        s_acc[...] = jnp.zeros_like(s_acc)
        rs_col[...] = jnp.zeros_like(rs_col)

    @pl.when(t < nt)
    def _accumulate():
        z = z_ref[0]                                          # (Mp, TN)
        rs_col[...] += jnp.sum(z.astype(jnp.float32), axis=-1, keepdims=True)
        zl = z.astype(slab_dtype)
        # A·Aᵀ via contraction over the last (lane) axis of both operands.
        s_acc[...] += lax.dot_general(zl, zl, (((1,), (1,)), ((), ())),
                                      preferred_element_type=jnp.float32)

    @pl.when(t == nt - 1)
    def _solve():
        B, bmean = _solve_whitening(s_acc[...], rs_col[...], T=T, eps=eps,
                                    n_true=n_true, m_true=m_true)
        bmean_scr[...] = bmean
        b_scr[...] = B.astype(b_scr.dtype)                    # pre-cast once

    @pl.when(t >= nt)
    def _emit():
        zl = z_ref[0].astype(slab_dtype)
        w = jnp.dot(b_scr[...], zl,
                    preferred_element_type=jnp.float32) - bmean_scr[...]
        # Padded rows are zero (masked eye); padded columns (if any) are
        # sliced off in the wrapper, so the store stays lane-dense/unmasked.
        o_ref[0] = w.astype(o_ref.dtype)


# ----------------------------------------------------------------------------
# Wrapper
# ----------------------------------------------------------------------------
def ortho_trans(weight: jax.Array, *, T: int = 5, norm_groups: int = 2,
                eps: float = 1e-4, tile_n: int | None = None,
                matmul_dtype=None, force_streaming: bool = False) -> jax.Array:
    """Pallas implementation of Ortho_Trans.forward (OIHW conv weight)."""
    G = norm_groups
    c_out = weight.shape[0]
    assert c_out % G == 0
    M = c_out // G
    Z = weight.reshape(G, M, -1)
    N = Z.shape[-1]
    out_dt = weight.dtype

    if matmul_dtype is None:
        # bf16 for the N-wide matmuls only when the weight itself is bf16.
        matmul_dtype = jnp.bfloat16 if weight.dtype == jnp.bfloat16 else jnp.float32

    in_bytes = weight.dtype.itemsize
    out_bytes = out_dt.itemsize
    slab_bytes = jnp.dtype(matmul_dtype).itemsize

    Mp = _round_up(M, 8)                       # sublane-aligned rows
    Np0 = _round_up(N, 128)                    # lane-dense columns

    # ---- generation-aware VMEM budgets (v7x: 64 MiB, v5e/v6e: 128 MiB) ----
    try:
        vmem_cap = int(getattr(pltpu.get_tpu_info(), "vmem_capacity_bytes",
                               64 << 20))
    except Exception:
        vmem_cap = 64 << 20
    if vmem_cap > (96 << 20):                  # v5e / v6e class
        resident_budget = 64 << 20
        stream_block_budget = 12 << 20
        vmem_limit_cap = 100 << 20
    else:                                      # v7x class (leave headroom)
        resident_budget = 28 << 20
        stream_block_budget = 4 << 20
        vmem_limit_cap = 48 << 20

    ns_bytes = 8 * Mp * Mp * 4 + Mp * Mp * slab_bytes + 4 * Mp * 4

    # ---- resident-slab (single pass, 1R+1W) decision -----------------------
    chunk = min(Np0, 1024)
    resident_bytes = (2 * Mp * Np0 * in_bytes      # double-buffered input slab
                      + 2 * Mp * Np0 * out_bytes   # double-buffered output slab
                      + 3 * Mp * chunk * 4         # per-chunk temporaries
                      + ns_bytes + (2 << 20))      # NS temps + margin
    use_resident = (not force_streaming) and (resident_bytes <= resident_budget)

    if use_resident:
        aligned = (Mp == M) and (Np0 == N)
        Zp = Z if aligned else jnp.pad(Z, ((0, 0), (0, Mp - M), (0, Np0 - N)))

        kernel = functools.partial(_ortho_resident_kernel, T=T, eps=float(eps),
                                   n_true=N, m_true=M, chunk=chunk,
                                   slab_dtype=matmul_dtype)
        cost = pl.CostEstimate(
            flops=G * (4 * M * M * N + 6 * T * M ** 3),
            transcendentals=4 * G,
            bytes_accessed=G * M * N * (in_bytes + out_bytes))

        out = pl.pallas_call(
            kernel,
            out_shape=jax.ShapeDtypeStruct((G, Mp, Np0), out_dt),
            grid=(G,),
            in_specs=[pl.BlockSpec((1, Mp, Np0), lambda g: (g, 0, 0))],
            out_specs=pl.BlockSpec((1, Mp, Np0), lambda g: (g, 0, 0)),
            compiler_params=pltpu.CompilerParams(
                dimension_semantics=("parallel",),
                vmem_limit_bytes=int(min(max(resident_bytes, 16 << 20),
                                         vmem_limit_cap))),
            cost_estimate=cost,
        )(Zp)
        if aligned:
            return out.reshape(weight.shape)
        return out[:, :M, :N].reshape(weight.shape)

    # ---- streaming fallback path -------------------------------------------
    # Tile sizing: pick NT first, then TN, so padding stays < 128 cols/tile.
    if tile_n is not None:
        tn = _round_up(tile_n, 128)
    else:
        tn = max(128, (stream_block_budget // (in_bytes * Mp)) // 128 * 128)
    tn = min(tn, Np0)
    NT = _cdiv(Np0, tn)
    TN = _round_up(_cdiv(Np0, NT), 128)
    Np = NT * TN

    aligned = (Mp == M) and (Np == N)
    Zp = Z if aligned else jnp.pad(Z, ((0, 0), (0, Mp - M), (0, Np - N)))

    kernel = functools.partial(_ortho_stream_kernel, T=T, eps=float(eps),
                               n_true=N, m_true=M, nt=NT,
                               slab_dtype=matmul_dtype)

    # Deeper input buffering only pays off when the NS solve is long (big Mp).
    n_in_bufs = 3 if Mp >= 128 else 2
    stream_bytes = (n_in_bufs * Mp * TN * in_bytes + 2 * Mp * TN * out_bytes
                    + Mp * Mp * 4 + Mp * Mp * slab_bytes + 2 * Mp * 4
                    + ns_bytes + (2 << 20))
    cost = pl.CostEstimate(
        flops=G * (4 * M * M * N + 6 * T * M ** 3),
        transcendentals=4 * G,
        bytes_accessed=G * M * N * (2 * in_bytes + out_bytes))

    out = pl.pallas_call(
        kernel,
        out_shape=jax.ShapeDtypeStruct((G, Mp, Np), out_dt),
        grid=(G, 2 * NT),
        in_specs=[_buffered_block_spec((1, Mp, TN),
                                       lambda g, t: (g, 0, t % NT),
                                       n_in_bufs)],
        # Output block index is held constant for the whole accumulate phase
        # and written from t == NT on (consecutive-revisit semantics).
        out_specs=pl.BlockSpec((1, Mp, TN),
                               lambda g, t: (g, 0, jnp.maximum(t - NT, 0))),
        scratch_shapes=[
            pltpu.VMEM((Mp, Mp), jnp.float32),     # Z·Zᵀ accumulator
            pltpu.VMEM((Mp, 1), jnp.float32),      # row sums (column vector)
            pltpu.VMEM((Mp, 1), jnp.float32),      # B_scaled @ mean
            pltpu.VMEM((Mp, Mp), matmul_dtype),    # B_scaled, pre-cast
        ],
        compiler_params=pltpu.CompilerParams(
            dimension_semantics=("parallel", "arbitrary"),
            vmem_limit_bytes=int(min(max(stream_bytes, 16 << 20),
                                     vmem_limit_cap))),
        cost_estimate=cost,
    )(Zp)
    if aligned:
        return out.reshape(weight.shape)
    return out[:, :M, :N].reshape(weight.shape)


# ----------------------------------------------------------------------------
# Pure-JAX reference (mirrors the PyTorch forward), for validation.
# ----------------------------------------------------------------------------
def _ortho_trans_ref(weight, *, T=5, norm_groups=2, eps=1e-4):
    G = norm_groups
    M = weight.shape[0] // G
    Z = weight.reshape(G, M, -1).astype(jnp.float32)
    Zc = Z - Z.mean(axis=-1, keepdims=True)
    S = jnp.einsum('gmn,gkn->gmk', Zc, Zc)
    eye = jnp.broadcast_to(jnp.eye(M, dtype=S.dtype), S.shape)
    S = S + eps * eye
    norm_S = jnp.sqrt(jnp.sum(S * S, axis=(1, 2), keepdims=True))
    S = S / norm_S
    B = eye
    for _ in range(T):
        B3 = jnp.einsum('gij,gjk->gik', jnp.einsum('gij,gjk->gik', B, B), B)
        B = 1.5 * B - 0.5 * jnp.einsum('gij,gjk->gik', B3, S)
    W = jnp.einsum('gij,gjn->gin', B, Zc) / jnp.sqrt(norm_S)
    return W.reshape(weight.shape).astype(weight.dtype)


if __name__ == "__main__":
    key = jax.random.PRNGKey(0)
    k1, k2, k3, k4 = jax.random.split(key, 4)

    # Tolerance sized for bf16 MXU input truncation under the default TPU
    # matmul precision (the reference einsums truncate the same way; exact
    # PyTorch-f32 parity would require precision=HIGHEST at real MXU cost).
    TOL = 3e-3

    def check(w, o, r):
        assert o.shape == w.shape and o.dtype == w.dtype
        err = float(jnp.max(jnp.abs(o.astype(jnp.float32) -
                                    r.astype(jnp.float32))))
        assert err < TOL, f"max abs err {err}"

    # 1) tiny conv weight (resident path with padding): G=2, M=4, N=36.
    w1 = jax.random.normal(k1, (8, 4, 3, 3), dtype=jnp.float32)
    o1 = jax.block_until_ready(ortho_trans(w1, T=5, norm_groups=2))
    check(w1, o1, _ortho_trans_ref(w1, T=5, norm_groups=2))

    # 2) streaming fallback, multi-tile N with ragged padding: G=2, M=32, N=288.
    w2 = jax.random.normal(k2, (64, 32, 3, 3), dtype=jnp.float32)
    o2 = jax.block_until_ready(
        ortho_trans(w2, T=5, norm_groups=2, tile_n=128, force_streaming=True))
    check(w2, o2, _ortho_trans_ref(w2, T=5, norm_groups=2))

    # 3) aligned resident path (no pad, no slice): G=2, M=8, N=128.
    w3 = jax.random.normal(k3, (16, 16, 4, 2), dtype=jnp.float32)
    o3 = jax.block_until_ready(ortho_trans(w3, T=5, norm_groups=2))
    check(w3, o3, _ortho_trans_ref(w3, T=5, norm_groups=2))

    # 4) aligned streaming path (no pad, single N tile): G=2, M=8, N=128.
    w4 = jax.random.normal(k4, (16, 64, 2, 1), dtype=jnp.float32)
    o4 = jax.block_until_ready(
        ortho_trans(w4, T=5, norm_groups=2, force_streaming=True))
    check(w4, o4, _ortho_trans_ref(w4, T=5, norm_groups=2))

    print("KERNEL_OK")
</pallas_src>

<mosaic_0001>
module attributes {stable_mosaic.version = 11 : i64} {
  func.func @_ortho_resident_kernel(%arg0: i32, %arg1: memref<1x8x128xf32, #tpu.memory_space<vmem>>, %arg2: memref<1x8x128xf32, #tpu.memory_space<vmem>>) attributes {dimension_semantics = [#tpu.dimension_semantics<parallel>], iteration_bounds = array<i64: 2>, scalar_prefetch = 0 : i64, scratch_operands = 0 : i64, tpu.core_type = #tpu.core_type<tc>, window_params = [{transform_indices = @transform_0, window_bounds = array<i64: 1, 8, 128>}, {transform_indices = @transform_1, window_bounds = array<i64: 1, 8, 128>}]} {
    %cst = arith.constant 0.000000e+00 : f32
    %0 = vector.broadcast %cst : f32 to vector<8x8xf32>
    %cst_0 = arith.constant 0.000000e+00 : f32
    %1 = vector.broadcast %cst_0 : f32 to vector<8x1xf32>
    %c0 = arith.constant 0 : index
    %c0_1 = arith.constant 0 : index
    %c0_2 = arith.constant 0 : index
    %2 = vector.load %arg1[%c0, %c0_1, %c0_2] : memref<1x8x128xf32, #tpu.memory_space<vmem>>, vector<1x8x128xf32>
    %3 = vector.shape_cast %2 : vector<1x8x128xf32> to vector<8x128xf32>
    %cst_3 = arith.constant dense<0.000000e+00> : vector<8xf32>
    %4 = vector.multi_reduction <add>, %3, %cst_3 [1] : vector<8x128xf32> to vector<8xf32>
    %5 = vector.shape_cast %4 : vector<8xf32> to vector<8x1xf32>
    %6 = arith.addf %1, %5 : vector<8x1xf32>
    %cst_4 = arith.constant dense<0.000000e+00> : vector<8x8xf32>
    %7 = tpu.matmul %3, %3, %cst_4 {dimension_numbers = #tpu.dot_dimension_numbers<[1], [1], [0], [0], [0, 0, 1, 0], [], []>} : vector<8x128xf32>, vector<8x128xf32>, vector<8x8xf32> -> vector<8x8xf32>
    %8 = arith.addf %0, %7 : vector<8x8xf32>
    %cst_5 = arith.constant 0.027777778 : f32
    %9 = vector.broadcast %cst_5 : f32 to vector<8x1xf32>
    %10 = arith.mulf %6, %9 : vector<8x1xf32>
    %cst_6 = arith.constant dense<0.000000e+00> : vector<8x8xf32>
    %11 = tpu.matmul %10, %6, %cst_6 {dimension_numbers = #tpu.dot_dimension_numbers<[1], [1], [0], [0], [0, 0, 1, 0], [], []>} : vector<8x1xf32>, vector<8x1xf32>, vector<8x8xf32> -> vector<8x8xf32>
    %12 = arith.subf %8, %11 : vector<8x8xf32>
    %13 = tpu.iota {dimensions = array<i32: 0>} : vector<8x8xi32>
    %14 = tpu.iota {dimensions = array<i32: 1>} : vector<8x8xi32>
    %15 = arith.cmpi eq, %13, %14 : vector<8x8xi32>
    %c4_i32 = arith.constant 4 : i32
    %16 = vector.broadcast %c4_i32 : i32 to vector<8x8xi32>
    %17 = arith.cmpi slt, %13, %16 : vector<8x8xi32>
    %18 = arith.andi %15, %17 : vector<8x8xi1>
    %cst_7 = arith.constant 1.000000e+00 : f32
    %cst_8 = arith.constant 0.000000e+00 : f32
    %19 = vector.broadcast %cst_7 : f32 to vector<8x8xf32>
    %20 = vector.broadcast %cst_8 : f32 to vector<8x8xf32>
    %21 = arith.select %18, %19, %20 : vector<8x8xi1>, vector<8x8xf32>
    %cst_9 = arith.constant 9.99999974E-5 : f32
    %22 = vector.broadcast %cst_9 : f32 to vector<8x8xf32>
    %23 = arith.mulf %22, %21 : vector<8x8xf32>
    %24 = arith.addf %12, %23 : vector<8x8xf32>
    %25 = arith.mulf %24, %24 : vector<8x8xf32>
    %26 = vector.shape_cast %25 : vector<8x8xf32> to vector<1x8x8xf32>
    %cst_10 = arith.constant dense<0.000000e+00> : vector<1xf32>
    %27 = vector.multi_reduction <add>, %26, %cst_10 [1, 2] : vector<1x8x8xf32> to vector<1xf32>
    %28 = vector.shape_cast %27 : vector<1xf32> to vector<1x1x1xf32>
    %29 = vector.extract %28[0, 0, 0] : f32 from vector<1x1x1xf32>
    %30 = math.rsqrt %29 : f32
    %31 = vector.broadcast %30 : f32 to vector<8x8xf32>
    %32 = arith.mulf %24, %31 : vector<8x8xf32>
    %c0_i32 = arith.constant 0 : i32
    %cst_11 = arith.constant dense<0.000000e+00> : vector<8x8xf32>
    %33 = tpu.matmul %21, %21, %cst_11 {dimension_numbers = #tpu.dot_dimension_numbers<[1], [0], [0], [1], [0, 0, 1, 1], [], []>} : vector<8x8xf32>, vector<8x8xf32>, vector<8x8xf32> -> vector<8x8xf32>
    %cst_12 = arith.constant dense<0.000000e+00> : vector<8x8xf32>
    %34 = tpu.matmul %33, %21, %cst_12 {dimension_numbers = #tpu.dot_dimension_numbers<[1], [0], [0], [1], [0, 0, 1, 1], [], []>} : vector<8x8xf32>, vector<8x8xf32>, vector<8x8xf32> -> vector<8x8xf32>
    %cst_13 = arith.constant 1.500000e+00 : f32
    %35 = vector.broadcast %cst_13 : f32 to vector<8x8xf32>
    %36 = arith.mulf %35, %21 : vector<8x8xf32>
    %cst_14 = arith.constant dense<0.000000e+00> : vector<8x8xf32>
    %37 = tpu.matmul %34, %32, %cst_14 {dimension_numbers = #tpu.dot_dimension_numbers<[1], [0], [0], [1], [0, 0, 1, 1], [], []>} : vector<8x8xf32>, vector<8x8xf32>, vector<8x8xf32> -> vector<8x8xf32>
    %cst_15 = arith.constant 5.000000e-01 : f32
    %38 = vector.broadcast %cst_15 : f32 to vector<8x8xf32>
    %39 = arith.mulf %38, %37 : vector<8x8xf32>
    %40 = arith.subf %36, %39 : vector<8x8xf32>
    %c1_i32 = arith.constant 1 : i32
    %cst_16 = arith.constant dense<0.000000e+00> : vector<8x8xf32>
    %41 = tpu.matmul %40, %40, %cst_16 {dimension_numbers = #tpu.dot_dimension_numbers<[1], [0], [0], [1], [0, 0, 1, 1], [], []>} : vector<8x8xf32>, vector<8x8xf32>, vector<8x8xf32> -> vector<8x8xf32>
    %cst_17 = arith.constant dense<0.000000e+00> : vector<8x8xf32>
    %42 = tpu.matmul %41, %40, %cst_17 {dimension_numbers = #tpu.dot_dimension_numbers<[1], [0], [0], [1], [0, 0, 1, 1], [], []>} : vector<8x8xf32>, vector<8x8xf32>, vector<8x8xf32> -> vector<8x8xf32>
    %cst_18 = arith.constant 1.500000e+00 : f32
    %43 = vector.broadcast %cst_18 : f32 to vector<8x8xf32>
    %44 = arith.mulf %43, %40 : vector<8x8xf32>
    %cst_19 = arith.constant dense<0.000000e+00> : vector<8x8xf32>
    %45 = tpu.matmul %42, %32, %cst_19 {dimension_numbers = #tpu.dot_dimension_numbers<[1], [0], [0], [1], [0, 0, 1, 1], [], []>} : vector<8x8xf32>, vector<8x8xf32>, vector<8x8xf32> -> vector<8x8xf32>
    %cst_20 = arith.constant 5.000000e-01 : f32
    %46 = vector.broadcast %cst_20 : f32 to vector<8x8xf32>
    %47 = arith.mulf %46, %45 : vector<8x8xf32>
    %48 = arith.subf %44, %47 : vector<8x8xf32>
    %c2_i32 = arith.constant 2 : i32
    %cst_21 = arith.constant dense<0.000000e+00> : vector<8x8xf32>
    %49 = tpu.matmul %48, %48, %cst_21 {dimension_numbers = #tpu.dot_dimension_numbers<[1], [0], [0], [1], [0, 0, 1, 1], [], []>} : vector<8x8xf32>, vector<8x8xf32>, vector<8x8xf32> -> vector<8x8xf32>
    %cst_22 = arith.constant dense<0.000000e+00> : vector<8x8xf32>
    %50 = tpu.matmul %49, %48, %cst_22 {dimension_numbers = #tpu.dot_dimension_numbers<[1], [0], [0], [1], [0, 0, 1, 1], [], []>} : vector<8x8xf32>, vector<8x8xf32>, vector<8x8xf32> -> vector<8x8xf32>
    %cst_23 = arith.constant 1.500000e+00 : f32
    %51 = vector.broadcast %cst_23 : f32 to vector<8x8xf32>
    %52 = arith.mulf %51, %48 : vector<8x8xf32>
    %cst_24 = arith.constant dense<0.000000e+00> : vector<8x8xf32>
    %53 = tpu.matmul %50, %32, %cst_24 {dimension_numbers = #tpu.dot_dimension_numbers<[1], [0], [0], [1], [0, 0, 1, 1], [], []>} : vector<8x8xf32>, vector<8x8xf32>, vector<8x8xf32> -> vector<8x8xf32>
    %cst_25 = arith.constant 5.000000e-01 : f32
    %54 = vector.broadcast %cst_25 : f32 to vector<8x8xf32>
    %55 = arith.mulf %54, %53 : vector<8x8xf32>
    %56 = arith.subf %52, %55 : vector<8x8xf32>
    %c3_i32 = arith.constant 3 : i32
    %cst_26 = arith.constant dense<0.000000e+00> : vector<8x8xf32>
    %57 = tpu.matmul %56, %56, %cst_26 {dimension_numbers = #tpu.dot_dimension_numbers<[1], [0], [0], [1], [0, 0, 1, 1], [], []>} : vector<8x8xf32>, vector<8x8xf32>, vector<8x8xf32> -> vector<8x8xf32>
    %cst_27 = arith.constant dense<0.000000e+00> : vector<8x8xf32>
    %58 = tpu.matmul %57, %56, %cst_27 {dimension_numbers = #tpu.dot_dimension_numbers<[1], [0], [0], [1], [0, 0, 1, 1], [], []>} : vector<8x8xf32>, vector<8x8xf32>, vector<8x8xf32> -> vector<8x8xf32>
    %cst_28 = arith.constant 1.500000e+00 : f32
    %59 = vector.broadcast %cst_28 : f32 to vector<8x8xf32>
    %60 = arith.mulf %59, %56 : vector<8x8xf32>
    %cst_29 = arith.constant dense<0.000000e+00> : vector<8x8xf32>
    %61 = tpu.matmul %58, %32, %cst_29 {dimension_numbers = #tpu.dot_dimension_numbers<[1], [0], [0], [1], [0, 0, 1, 1], [], []>} : vector<8x8xf32>, vector<8x8xf32>, vector<8x8xf32> -> vector<8x8xf32>
    %cst_30 = arith.constant 5.000000e-01 : f32
    %62 = vector.broadcast %cst_30 : f32 to vector<8x8xf32>
    %63 = arith.mulf %62, %61 : vector<8x8xf32>
    %64 = arith.subf %60, %63 : vector<8x8xf32>
    %c4_i32_31 = arith.constant 4 : i32
    %cst_32 = arith.constant dense<0.000000e+00> : vector<8x8xf32>
    %65 = tpu.matmul %64, %64, %cst_32 {dimension_numbers = #tpu.dot_dimension_numbers<[1], [0], [0], [1], [0, 0, 1, 1], [], []>} : vector<8x8xf32>, vector<8x8xf32>, vector<8x8xf32> -> vector<8x8xf32>
    %cst_33 = arith.constant dense<0.000000e+00> : vector<8x8xf32>
    %66 = tpu.matmul %65, %64, %cst_33 {dimension_numbers = #tpu.dot_dimension_numbers<[1], [0], [0], [1], [0, 0, 1, 1], [], []>} : vector<8x8xf32>, vector<8x8xf32>, vector<8x8xf32> -> vector<8x8xf32>
    %cst_34 = arith.constant 1.500000e+00 : f32
    %67 = vector.broadcast %cst_34 : f32 to vector<8x8xf32>
    %68 = arith.mulf %67, %64 : vector<8x8xf32>
    %cst_35 = arith.constant dense<0.000000e+00> : vector<8x8xf32>
    %69 = tpu.matmul %66, %32, %cst_35 {dimension_numbers = #tpu.dot_dimension_numbers<[1], [0], [0], [1], [0, 0, 1, 1], [], []>} : vector<8x8xf32>, vector<8x8xf32>, vector<8x8xf32> -> vector<8x8xf32>
    %cst_36 = arith.constant 5.000000e-01 : f32
    %70 = vector.broadcast %cst_36 : f32 to vector<8x8xf32>
    %71 = arith.mulf %70, %69 : vector<8x8xf32>
    %72 = arith.subf %68, %71 : vector<8x8xf32>
    %73 = math.sqrt %29 : f32
    %74 = math.rsqrt %73 : f32
    %75 = vector.broadcast %74 : f32 to vector<8x8xf32>
    %76 = arith.mulf %72, %75 : vector<8x8xf32>
    %cst_37 = arith.constant dense<0.000000e+00> : vector<8x1xf32>
    %77 = tpu.matmul %76, %10, %cst_37 {dimension_numbers = #tpu.dot_dimension_numbers<[1], [0], [0], [1], [0, 0, 1, 1], [], []>} : vector<8x8xf32>, vector<8x1xf32>, vector<8x1xf32> -> vector<8x1xf32>
    %c0_38 = arith.constant 0 : index
    %c0_39 = arith.constant 0 : index
    %c0_40 = arith.constant 0 : index
    %78 = vector.load %arg1[%c0_38, %c0_39, %c0_40] : memref<1x8x128xf32, #tpu.memory_space<vmem>>, vector<1x8x128xf32>
    %79 = vector.shape_cast %78 : vector<1x8x128xf32> to vector<8x128xf32>
    %cst_41 = arith.constant dense<0.000000e+00> : vector<8x128xf32>
    %80 = tpu.matmul %76, %79, %cst_41 {dimension_numbers = #tpu.dot_dimension_numbers<[1], [0], [0], [1], [0, 0, 1, 1], [], []>} : vector<8x8xf32>, vector<8x128xf32>, vector<8x128xf32> -> vector<8x128xf32>
    %81 = vector.broadcast %77 : vector<8x1xf32> to vector<8x128xf32>
    %82 = arith.subf %80, %81 : vector<8x128xf32>
    %c0_42 = arith.constant 0 : index
    %c0_43 = arith.constant 0 : index
    %c0_44 = arith.constant 0 : index
    %83 = vector.load %arg2[%c0_42, %c0_43, %c0_44] : memref<1x8x128xf32, #tpu.memory_space<vmem>>, vector<1x8x128xf32>
    %84 = vector.shape_cast %83 : vector<1x8x128xf32> to vector<8x128xf32>
    %85 = vector.shape_cast %82 : vector<8x128xf32> to vector<1x8x128xf32>
    tpu.vector_store %arg2[%c0_42, %c0_43, %c0_44], %85 {strides = array<i32>} : memref<1x8x128xf32, #tpu.memory_space<vmem>>, vector<1x8x128xf32>,
    return
  }
  func.func @transform_0(%arg0: i32) -> (i32, i32, i32) {
    %c0_i32 = arith.constant 0 : i32
    %c0_i32_0 = arith.constant 0 : i32
    %c0_i32_1 = arith.constant 0 : i32
    return %arg0, %c0_i32, %c0_i32_0 : i32, i32, i32
  }
  func.func @transform_1(%arg0: i32) -> (i32, i32, i32) {
    %c0_i32 = arith.constant 0 : i32
    %c0_i32_0 = arith.constant 0 : i32
    %c0_i32_1 = arith.constant 0 : i32
    return %arg0, %c0_i32, %c0_i32_0 : i32, i32, i32
  }
}

</mosaic_0001>

<bundles_post_ra>
// kernel: tpu_custom_call.1
= control target key start
LH: loop header
LB: loop body
LE: loop exit
PB: predicated region body
PF: predicated region fallthrough
CT: control target
= control target key end

     0   :  { %6 = vsyncpa [#allocation3], 0  ;;  %s1118_s0 = inlined_call_operand.hbm [shape: f32[2,8,128], index: 0, kind: input, shape index: {}]   ;;  %s1119_s1 = inlined_call_operand.hbm [shape: f32[2,8,128], index: 1, kind: output, shape index: {}]  }
   0x1   :  { %8 = vsyncpa [#allocation3 + $0x1], 0 }
   0x2   :  { %9 = vsyncpa [#allocation4], 0 }
   0x3   :  { %11 = vsyncpa [#allocation4 + $0x1], 0  ;;  %s954_s6 = smov 0   ;;  %s956_s7 = smov 0  }
   0x4   :  { %s958_s8 = smov 0   ;;  %s960_s9 = smov 0  }
   0x5 LB: > { %s975_s10 = sadd.s32 4294967295, %s939_s9   ;;  %s747_s11 = sadd.s32 4294967294, %s939_s9   ;;  %s939_s9 = sphi %s960_s9, %s1129_s9   ;;  %s935_s8 = sphi %s958_s8, %s1128_s8   ;;  %s931_s7 = sphi %s956_s7, %s1127_s7   ;;  %s927_s6 = sphi %s954_s6, %s1126_s6  }
   0x6   : > { %s979_s12 = sadd.s32 1, %s939_s9   ;;  %s24_s13 = sadd.s32 1, %s935_s8 }
   0x7   : > { %s21_s14 = ssub.s32 %s939_s9, %s979_s12  ;;  %p31_p0 = scmp.ne.s32.totalorder %s935_s8, %s931_s7 }
   0x8   : > { %p22_p1 = scmp.eq.s32.totalorder %s21_s14, 0  ;;  %p32_p2 = scmp.eq.s32.totalorder %s939_s9, 0 }
   0x9   : > { %p37_p3 = scmp.ne.s32.totalorder %s931_s7, %s927_s6  ;;  %p38_p4 = scmp.eq.s32.totalorder %s975_s10, 0 }
   0xa   : > { %s991_s15 = scalar_select %p22_p1, %s935_s8, %s24_s13  }
   0xb   : > { %p993_p5 = por %p32_p2, %p31_p0  ;;  %p997_p6 = por %p38_p4, %p37_p3 }
   0xc   : > { %p61_p7 = scmp.eq.s32.totalorder %s975_s10, 1  ;;  %p67_p8 = scmp.eq.s32.totalorder %s747_s11, 1 }
   0xd   : > { %p800_p10 = scmp.lt.s32.totalorder %s939_s9, 2  ;;  %s87_s20 = sand.u32 1, %s935_s8  }
   0xe   : > { %p1004_p11 = por %p61_p7, %p31_p0  ;;  %p1008_p12 = por %p67_p8, %p37_p3 }
   0xf   : > { %s751_s21 = sshll.u32 %s939_s9, 3  ;;  %s750_s22 = sshll.u32 %s87_s20, 3 }
  0x10   : > { %s95_s25 = scalar_lea.hbm %s1118_s0, %s751_s21  ;;  %s91_s27 = scalar_lea.vmem [#allocation2], %s750_s22 }
  0x11   : > { %s97_s26 = sshll.u32 %s95_s25, 4  ;;  %s99_s28 = sshll.u32 %s91_s27, 4  ;;  %s98_s26 = int_to_ptr.hbm [resolvable:$true] %s97_s26  ;;  %s100_s28 = int_to_ptr.vmem [resolvable:$true] %s99_s28 }
  0x12   : > { %p1019_p13 = pnand %p800_p10, %p993_p5  ;;  %p752_p0 = scmp.ge.s32.totalorder %s939_s9, 1 }
  0x13   : > { %p104_p1 = scmp.lt.s32.totalorder %s939_s9, 3  ;;  %s88_s30 = scalar_lea.sflag [#allocation3], %s87_s20 }
  0x14   : > { %s843_s2 = sshra.s32 %s98_s26, 4  ;;  %p847_p3 = pneg %p1019_p13  ;;  %s844_s2 = int_to_ptr.hbm [resolvable:$true] %s843_s2 }
  0x15   : > { %s845_s3 = scalar_lea.hbm %s844_s2, 8  ;;  %s850_s11 = scalar_lea.hbm %s1118_s0, 16 }
  0x16   : > { %p846_p2 = scmp.ne.s32.totalorder %s844_s2, %s845_s3  ;;  %p851_p5 = scmp.lt.s32.totalorder %s844_s2, %s1118_s0 }
  0x17   : > { %p852_p8 = scmp.lt.s32.totalorder %s850_s11, %s845_s3 }
  0x18   : > { %p848_p4 = pnand %p847_p3, %p846_p2 }
  0x19   : > { %p853_p10 = por %p852_p8, %p851_p5 }
  0x1a   : > { %p849_p7 = pneg %p848_p4 }
  0x1c   : > { %p854_p9 = pnand %p853_p10, %p849_p7 }
  0x1e   : > { %857 = shalt.err (!%p854_p9)
}
  0x1f   : > { %795 = dma.hbm_to_vmem [thread:$0]  (!%p1019_p13), %s98_s26, 128, %s100_s28, %s88_s30  }
  0x20   : > { %p105_p2 = pnand %p752_p0, %p104_p1 }
  0x21   : > { %s1040_s16 = sand.u32 (!%p105_p2), 1, %s931_s7  }
  0x22   : > { %108 = sbr.rel (%p105_p2) target bundleno = 2502 (0x9c6), region = 24  ;;  %s753_s20 = sshll.u32 (!%p105_p2), %s1040_s16, 3 }
  0x23   : > { %s111_s21 = scalar_lea.sflag (!%p105_p2), [#allocation3], %s1040_s16  ;;  %s114_s22 = scalar_lea.vmem (!%p105_p2), [#allocation2], %s753_s20 }
  0x27   : > { %918 = dma.done.wait (%p997_p6), %s111_s21, 128  }
  0x28   : > { %920 = vsyncadd (%p997_p6), %s111_s21, 4294967168  ;;  %v1050_v0 = vld [vmem:[%s114_s22] sm:$0xff]  ;;  %v187_v1 = vlaneseq  ;;  %vm198_vm2 = vcmask 64512   ;;  %v941_v4 = vmov 1.0   ;;  %v942_v5 = vmov 0.0   ;;  %s777_s26 = sshll.u32 %s975_s10, 3 }
  0x29   : > { %135 = vadd.xlane.f32.xlu0 %v1050_v0  ;;  %153 = vmatpush.xpose.msra.mxu0 %v1050_v0  ;;  %vm159_vm4 = vcmask 7168   ;;  %s672_s29 = scalar_lea.hbm %s1119_s1, %s777_s26  ;;  %s133_s30 = scalar_lea.vmem [#allocation5], %s753_s20 }
  0x2a   : > { %v188_v2 = vshrl.u32 %v187_v1, 7  ;;  %v190_v3 = vand.u32 127, %v187_v1  ;;  %s674_s2 = sshll.u32 %s133_s30, 4  ;;  %s676_s3 = sshll.u32 %s672_s29, 4  ;;  %s675_s2 = int_to_ptr.vmem [resolvable:$true] %s674_s2  ;;  %s677_s3 = int_to_ptr.hbm [resolvable:$true] %s676_s3 }
  0x2b   : > { %s662_s4 = scalar_lea.sflag [#allocation4], %s1040_s16  ;;  %s887_s5 = sshra.s32 %s677_s3, 4  ;;  %s888_s5 = int_to_ptr.hbm [resolvable:$true] %s887_s5 }
  0x2c   : > { %154 = vmatmul.f32.vlgmr.msra.gmra.mxu0 %v1050_v0  ;;  %vm191_vm0 = vcmp.eq.s32.totalorder %v188_v2, %v190_v3  ;;  %vm192_vm1 = vcmp.lt.s32.totalorder %v188_v2, 4  ;;  %s889_s11 = scalar_lea.hbm %s888_s5, 8  ;;  %s893_s14 = scalar_lea.hbm %s1119_s1, 16 }
  0x2d   : > { %vm193_vm3 = vmand %vm191_vm0, %vm192_vm1  ;;  %p890_p6 = scmp.ne.s32.totalorder %s888_s5, %s889_s11  ;;  %p894_p0 = scmp.lt.s32.totalorder %s888_s5, %s1119_s1 }
  0x2e   : > { %757 = vmatpush.msk.msra.mxu2 %vm193_vm3, %v941_v4  ;;  %v1055_v6 = vsel %vm193_vm3, 1.0, %v942_v5  ;;  %759 = vmatpush.msk.msra.mxu3 %vm193_vm3, %v941_v4  ;;  %p895_p1 = scmp.lt.s32.totalorder %s893_s14, %s889_s11 }
  0x2f   : > { %758 = vmatmul.msk.f32.vlgmr.msra.gmra.mxu2 %vm198_vm2, %v1055_v6  ;;  %v195_v10 = vmul.f32 0.0001, %v1055_v6  ;;  %v269_v47 = vmul.f32 1.5, %v1055_v6  ;;  %p891_p9 = pnand %p890_p6, %p1004_p11 }
  0x30   : > { %p896_p3 = por %p895_p1, %p894_p0 }
  0x31   : > { %p892_p13 = pneg %p891_p9 }
  0x33   : > { %p897_p4 = pnand %p896_p3, %p892_p13 }
  0x9c   : > { %v136_v7 = vpop.xlane.xlu0 %135 }
  0x9d   : > { %v1059_v8 = vmul.f32 0.027777778, %v136_v7  ;;  %755 = vmatpush.xpose.msk.msra.mxu1 %vm159_vm4, %v136_v7 }
  0xa0   : > { %756 = vmatmul.msk.f32.vlgmr.msra.gmra.mxu1 %vm159_vm4, %v1059_v8 }
  0xa9   : > { %v155_v9 = vpop.f32.mrf.mxu0 }
  0xb2   : > { %v243_v16 = vpop.f32.mrf.mxu2 }
  0xb3   : > { %760 = vmatmul.msk.f32.vlgmr.msra.gmra.mxu3 %vm198_vm2, %v243_v16 }
 0x11d   : > { %v183_v11 = vpop.f32.mrf.mxu1 }
 0x11e   : > { %v186_v12 = vsub.f32 %v155_v9, %v183_v11 }
 0x120   : > { %v196_v13 = vadd.f32 %v195_v10, %v186_v12 }
 0x122   : > { %v197_v14 = vmul.f32 %v196_v13, %v196_v13 }
 0x124   : > { %v199_v15 = vsel %vm198_vm2, %v197_v14, 0.0 }
 0x125   : > { %200 = vadd.xlane.f32.xlu0 %v199_v15 }
 0x136   : > { %v266_v38 = vpop.f32.mrf.mxu3 }
 0x198   : > { %v201_v17 = vpop.xlane.xlu0 %200 }
 0x199   : > { %v202_v18 = vrot.slane %v201_v17, 4 }
 0x19b   : > { %v203_v19 = vadd.f32 %v202_v18, %v201_v17 }
 0x19d   : > { %v204_v20 = vrot.slane %v203_v19, 2 }
 0x19f   : > { %v205_v21 = vadd.f32 %v204_v20, %v203_v19 }
 0x1a1   : > { %v206_v22 = vrot.slane %v205_v21, 1 }
 0x1a3   : > { %v207_v23 = vadd.f32 %v206_v22, %v205_v21 }
 0x1a5   : > { %780 = vpush %v207_v23 }
 0x1d6   : > { %s781_s17 = spop %780 }
 0x1d7   : > { %v209_v24 = vstv %s781_s17 }
 0x1d8   : > { %839 = vrsqrt.f32 %v209_v24  ;;  %vm216_vm6 = vweird.f32 %v209_v24  ;;  %vm591_vm8 = vcmp.eq.f32.partialorder %v209_v24, inf  ;;  %v594_v33 = vand.u32 2147483648, %v209_v24 }
 0x1d9   : > { %vm593_vm9 = vcmp.eq.f32.partialorder %v209_v24, 0.0 }
 0x1de   : > { %v840_v25 = vpop.eup %839 }
 0x1df   : > { %v211_v26 = vmul.f32 %v840_v25, %v209_v24  ;;  %vm217_vm5 = vweird.f32 %v840_v25 }
 0x1e0   : > { %vm218_vm7 = vmor %vm216_vm6, %vm217_vm5 }
 0x1e1   : > { %v212_v27 = vmul.f32 %v840_v25, %v211_v26 }
 0x1e3   : > { %v213_v28 = vmul.f32 0.5, %v212_v27 }
 0x1e5   : > { %v214_v29 = vsub.f32 1.5, %v213_v28 }
 0x1e7   : > { %v215_v30 = vmul.f32 %v840_v25, %v214_v29 }
 0x1e9   : > { %v219_v31 = vsel %vm218_vm7, %v840_v25, %v215_v30  ;;  %v590_v32 = vmul.f32 %v215_v30, %v209_v24 }
 0x1ea   : > { %782 = vpush %v219_v31 }
 0x1eb   : > { %v592_v34 = vsel %vm591_vm8, %v209_v24, %v590_v32 }
 0x1ec   : > { %v595_v35 = vsel %vm593_vm9, %v594_v33, %v592_v34 }
 0x1ed   : > { %784 = vpush %v595_v35 }
 0x21b   : > { %s783_s23 = spop %782 }
 0x21c   : > { %v221_v36 = vstv %s783_s23 }
 0x21d   : > { %v222_v37 = vmul.f32 %v221_v36, %v196_v13 }
 0x21e   : > { %s785_s24 = spop %784 }
 0x21f   : > { %v597_v39 = vstv %s785_s24  ;;  %288 = vmatpush.msrb.mxu2 %v222_v37  ;;  %360 = vmatpush.msrb.mxu1 %v222_v37 }
 0x220   : > { %841 = vrsqrt.f32 %v597_v39  ;;  %761 = vmatmul.msk.f32.vlgmr.msrb.gmra.mxu2 %vm198_vm2, %v266_v38  ;;  %vm604_vm11 = vweird.f32 %v597_v39 }
 0x226   : > { %v842_v40 = vpop.eup %841 }
 0x227   : > { %v599_v41 = vmul.f32 %v842_v40, %v597_v39  ;;  %vm605_vm10 = vweird.f32 %v842_v40 }
 0x228   : > { %vm606_vm12 = vmor %vm604_vm11, %vm605_vm10 }
 0x229   : > { %v600_v42 = vmul.f32 %v842_v40, %v599_v41 }
 0x22b   : > { %v601_v43 = vmul.f32 0.5, %v600_v42 }
 0x22d   : > { %v602_v44 = vsub.f32 1.5, %v601_v43 }
 0x22f   : > { %v603_v45 = vmul.f32 %v842_v40, %v602_v44 }
 0x231   : > { %v607_v46 = vsel %vm606_vm12, %v842_v40, %v603_v45 }
 0x232   : > { %786 = vpush %v607_v46 }
 0x263   : > { %s787_s25 = spop %786 }
 0x264   : > { %v609_v12 = vstv %s787_s25 }
 0x2a3   : > { %v290_v48 = vpop.f32.mrf.mxu2 }
 0x2a4   : > { %v293_v49 = vmul.f32 0.5, %v290_v48 }
 0x2a6   : > { %v294_v50 = vsub.f32 %v269_v47, %v293_v49 }
 0x2a8   : > { %313 = vmatpush.msrb.mxu3 %v294_v50  ;;  %336 = vmatpush.msrb.mxu0 %v294_v50  ;;  %v341_v54 = vmul.f32 1.5, %v294_v50 }
 0x2a9   : > { %762 = vmatmul.msk.f32.vlgmr.msrb.gmra.mxu3 %vm198_vm2, %v294_v50 }
 0x2aa   : > { %432 = vmatpush.msra.mxu0 %v222_v37 }
 0x32c   : > { %v315_v51 = vpop.f32.mrf.mxu3 }
 0x32d   : > { %763 = vmatmul.msk.f32.vlgmr.msrb.gmra.mxu0 %vm198_vm2, %v315_v51 }
 0x3aa   : > { %v338_v52 = vpop.f32.mrf.mxu0 }
 0x3ab   : > { %764 = vmatmul.msk.f32.vlgmr.msrb.gmra.mxu1 %vm198_vm2, %v338_v52 }
 0x428   : > { %v362_v53 = vpop.f32.mrf.mxu1 }
 0x429   : > { %v365_v55 = vmul.f32 0.5, %v362_v53 }
 0x42b   : > { %v366_v56 = vsub.f32 %v341_v54, %v365_v55 }
 0x42d   : > { %385 = vmatpush.msra.mxu2 %v366_v56  ;;  %408 = vmatpush.msra.mxu3 %v366_v56  ;;  %v413_v60 = vmul.f32 1.5, %v366_v56 }
 0x42e   : > { %765 = vmatmul.msk.f32.vlgmr.msra.gmra.mxu2 %vm198_vm2, %v366_v56 }
 0x42f   : > { %504 = vmatpush.msrb.mxu3 %v222_v37 }
 0x4b1   : > { %v387_v57 = vpop.f32.mrf.mxu2 }
 0x4b2   : > { %766 = vmatmul.msk.f32.vlgmr.msra.gmra.mxu3 %vm198_vm2, %v387_v57 }
 0x4b3   : > { %629 = vmatpush.msra.mxu3 %v1059_v8 }
 0x535   : > { %v410_v58 = vpop.f32.mrf.mxu3 }
 0x536   : > { %767 = vmatmul.msk.f32.vlgmr.msra.gmra.mxu0 %vm198_vm2, %v410_v58 }
 0x5b3   : > { %v434_v59 = vpop.f32.mrf.mxu0 }
 0x5b4   : > { %v437_v61 = vmul.f32 0.5, %v434_v59 }
 0x5b6   : > { %v438_v62 = vsub.f32 %v413_v60, %v437_v61 }
 0x5b8   : > { %457 = vmatpush.msra.mxu1 %v438_v62  ;;  %480 = vmatpush.msrb.mxu2 %v438_v62  ;;  %v485_v3 = vmul.f32 1.5, %v438_v62 }
 0x5b9   : > { %768 = vmatmul.msk.f32.vlgmr.msra.gmra.mxu1 %vm198_vm2, %v438_v62 }
 0x5ba   : > { %576 = vmatpush.msra.mxu2 %v222_v37 }
 0x636   : > { %v459_v63 = vpop.f32.mrf.mxu1 }
 0x637   : > { %769 = vmatmul.msk.f32.vlgmr.msrb.gmra.mxu2 %vm198_vm2, %v459_v63 }
 0x6ba   : > { %v482_v1 = vpop.f32.mrf.mxu2 }
 0x6bb   : > { %770 = vmatmul.msk.f32.vlgmr.msrb.gmra.mxu3 %vm198_vm2, %v482_v1 }
 0x73e   : > { %v506_v2 = vpop.f32.mrf.mxu3 }
 0x73f   : > { %v509_v4 = vmul.f32 0.5, %v506_v2 }
 0x741   : > { %v510_v5 = vsub.f32 %v485_v3, %v509_v4 }
 0x743   : > { %529 = vmatpush.msrb.mxu0 %v510_v5  ;;  %552 = vmatpush.msrb.mxu1 %v510_v5  ;;  %v557_v9 = vmul.f32 1.5, %v510_v5 }
 0x744   : > { %771 = vmatmul.msk.f32.vlgmr.msrb.gmra.mxu0 %vm198_vm2, %v510_v5 }
 0x745   : > { %649 = vmatpush.msra.mxu0 %v1050_v0  ;;  %v943_v0 = vmov 0  }
 0x746   : > { %837 = vset.pattern.permute.xlu1 %v943_v0  ;;  %838 = vset.pattern.permute.xlu0 %v943_v0 }
 0x7c1   : > { %v531_v6 = vpop.f32.mrf.mxu0 }
 0x7c2   : > { %772 = vmatmul.msk.f32.vlgmr.msrb.gmra.mxu1 %vm198_vm2, %v531_v6 }
 0x83f   : > { %v554_v7 = vpop.f32.mrf.mxu1 }
 0x840   : > { %773 = vmatmul.msk.f32.vlgmr.msra.gmra.mxu2 %vm198_vm2, %v554_v7 }
 0x8c3   : > { %v578_v8 = vpop.f32.mrf.mxu2 }
 0x8c4   : > { %v581_v10 = vmul.f32 0.5, %v578_v8 }
 0x8c6   : > { %v582_v11 = vsub.f32 %v557_v9, %v581_v10 }
 0x8c8   : > { %v610_v13 = vmul.f32 %v609_v12, %v582_v11 }
 0x8ca   : > { %774 = vmatmul.msk.f32.vlgmr.msra.gmra.mxu3 %vm198_vm2, %v610_v13  ;;  %775 = vmatmul.msk.f32.vlgmr.msra.gmra.mxu0 %vm198_vm2, %v610_v13 }
 0x947   : > { %v651_v15 = vpop.f32.mrf.mxu0 }
 0x94d   : > { %v631_v14 = vpop.f32.mrf.mxu3 }
 0x94e   : > { %656 = vperm.xlu1 %837, %v631_v14  }
 0x9c0   : > { %v657_v16 = vpop.permute.xlu1 %656 }
 0x9c1   : > { %v659_v17 = vsub.f32 %v651_v15, %v657_v16 }
 0x9c3   : > { %660 = vst [vmem:[%s133_s30] sm:$0xff] %v659_v17 }
 0x9c4   : > { %900 = shalt.err (!%p897_p4)
}
 0x9c5   : > { %790 = dma.vmem_to_hbm [thread:$0]  (%p1004_p11), %s675_s2, 128, %s677_s3, %s662_s4  }
 0x9c6 PF: > { %s688_s16 = sand.u32 1, %s927_s6   ;;  %p1125_p7 = scmp.ge.s32.totalorder %s939_s9, 2 }
 0x9c7   : > { %s689_s22 = scalar_lea.sflag [#allocation4], %s688_s16 }
 0x9c8   : > { %p797_p5 = pnand %p1125_p7, %p1008_p12 }
 0x9ca   : > { %p798_p8 = pneg %p797_p5 }
 0x9cc   : > { %922 = dma.done.wait (%p798_p8), %s689_s22, 128  }
 0x9cd   : > { %924 = vsyncadd (%p798_p8), %s689_s22, 4294967168  ;;  %p14_p10 = scmp.ge.s32.totalorder %s979_s12, 4   ;;  %s1126_s6 = smov %s931_s7 }
 0x9ce   : > { %s1127_s7 = smov %s935_s8  ;;  %s1128_s8 = smov %s991_s15 }
 0x9cf   : > { %s1129_s9 = smov %s979_s12  ;;  %16 = sbr.rel (!%p14_p10) target bundleno = 5 (0x5), region = 69 }
 0x9d4   :  { %695 = vsyncpa [#allocation3], 1 }
 0x9d5   :  { %697 = vsyncpa [#allocation3 + $0x1], 1 }
 0x9d6   :  { %698 = vsyncpa [#allocation4], 1 }
 0x9d7   :  { %700 = vsyncpa [#allocation4 + $0x1], 1 }

</bundles_post_ra>
